<compile_context>
chip_gen: v7x
topology: tpu7x:2x2x1
jax: 0.10.0
libtpu: 0.0.40
codegen_flags: <defaults>
</compile_context>

<pallas_src>
import numpy as np
import jax
import jax.numpy as jnp
from jax import lax
from jax.experimental import pallas as pl
from jax.experimental.pallas import tpu as pltpu


def _ca_layer_kernel(xd_ref, band1_ref, w2pool_ref, wc_ref, du_ref, out_ref,
                     pad_ref):
    # xd_ref    : (H, W*C)      f32  lane-dense activation (conv input + residual)
    # band1_ref : (3, W*C, W*C) bf16 conv1 band matrices (column padding folded in)
    # w2pool_ref: (3, W*C, C)   f32  pooled conv2 weights (1/(H*W) folded in)
    # wc_ref    : (C+1, W*C)    f32  rows 0..C-1: channel->lane replication matrix,
    #                                row C: conv1 bias tiled across w
    # du_ref    : (C+Cr+3, C)   f32  packed [wd1 | wd2 | b2 | bd1 | bd2]
    # pad_ref   : (H+2, W*C)    f32  VMEM scratch: row-halo-padded conv1 input
    H, WC = xd_ref.shape
    C = w2pool_ref.shape[2]
    Cr = du_ref.shape[0] - C - 3
    f32 = jnp.float32

    # ---- stage x into the row-padded scratch; zero only the 2 halo rows ----
    zero_row = jnp.zeros((1, WC), dtype=pad_ref.dtype)
    pad_ref[0:1, :] = zero_row
    pad_ref[H + 1:H + 2, :] = zero_row
    pad_ref[1:H + 1, :] = xd_ref[...]

    b1t = wc_ref[C:C + 1, :]                       # (1, W*C) conv1 bias, pre-tiled

    # ---- conv1 (3x3, SAME) as 3 banded MXU matmuls over row-shifted views ----
    # Row padding comes from the halo rows; column padding is inside band1.
    # Taps are cast to bf16 at the tap level; accumulation stays in f32.
    acc = jnp.dot(pad_ref[0:H, :].astype(jnp.bfloat16), band1_ref[0],
                  preferred_element_type=f32)
    acc = acc + jnp.dot(pad_ref[1:H + 1, :].astype(jnp.bfloat16), band1_ref[1],
                        preferred_element_type=f32)
    acc = acc + jnp.dot(pad_ref[2:H + 2, :].astype(jnp.bfloat16), band1_ref[2],
                        preferred_element_type=f32)
    y1 = jnp.maximum(acc + b1t, 0.0)               # (H, W*C)  relu(conv1(x))

    # ---- conv2 (3x3) + AdaptiveAvgPool2d(1), pooled BEFORE the matmul ----
    # mean(conv2(y1)) only needs per-kh row sums of y1 (column taps were folded
    # into w2pool on the host), so conv2's (H*W, C) map is never materialized.
    rs1 = jnp.sum(y1, axis=0, keepdims=True)       # rows used by kh = 1 (all)
    rs0 = rs1 - y1[H - 1:H, :]                     # kh = 0 excludes the last row
    rs2 = rs1 - y1[0:1, :]                         # kh = 2 excludes the first row
    b2 = du_ref[C + Cr:C + Cr + 1, 0:C]            # (1, C)
    y_avg = (jnp.dot(rs0, w2pool_ref[0], preferred_element_type=f32)
             + jnp.dot(rs1, w2pool_ref[1], preferred_element_type=f32)
             + jnp.dot(rs2, w2pool_ref[2], preferred_element_type=f32)
             + b2)                                 # (1, C)

    # ---- conv_du: 1x1 conv -> ReLU -> 1x1 conv -> sigmoid (tiny f32 dots) ----
    wd1 = du_ref[0:C, 0:Cr]
    wd2 = du_ref[C:C + Cr, 0:C]
    bd1 = du_ref[C + Cr + 1:C + Cr + 2, 0:Cr]
    bd2 = du_ref[C + Cr + 2:C + Cr + 3, 0:C]
    h = jnp.maximum(jnp.dot(y_avg, wd1, preferred_element_type=f32) + bd1, 0.0)
    z = jax.nn.sigmoid(jnp.dot(h, wd2, preferred_element_type=f32) + bd2)

    # ---- out = z * y_avg + x : channel->lane replication via a 0/1 matmul ----
    rep = wc_ref[0:C, :]                                           # (C, W*C)
    zy_wc = jnp.dot(z * y_avg, rep, preferred_element_type=f32)    # (1, W*C)
    out_ref[...] = (xd_ref[...] + zy_wc).astype(out_ref.dtype)


def _prepare_operands(params, H, W):
    """Host-side precompute of band / pooled / packed weight operands."""
    w1, b1, w2, b2, wd1, bd1, wd2, bd2 = [np.asarray(p, np.float32) for p in params]
    C = w1.shape[2]
    Cr = wd1.shape[1]
    WC = W * C

    # band1[kh, c*C+ci, w*C+co] = w1[kh, c-w+1, ci, co] for c-w+1 in {0,1,2}
    # (out-of-range column taps simply have zero entries == zero padding).
    band1 = np.zeros((3, WC, WC), np.float32)
    # w2pool folds conv2's column taps AND the global mean (1/(H*W)) together.
    w2pool = np.zeros((3, WC, C), np.float32)
    for kh in range(3):
        for w in range(W):
            for kw in range(3):
                c = w + kw - 1                     # input image column of this tap
                if 0 <= c < W:
                    band1[kh, c * C:(c + 1) * C, w * C:(w + 1) * C] = w1[kh, kw]
                    w2pool[kh, c * C:(c + 1) * C, :] += w2[kh, kw]
    w2pool /= float(H * W)

    # wc_pack: rows 0..C-1 = channel -> lane replication (lane w*C+co <- channel co),
    #          row C       = conv1 bias tiled W times (lane-dense bias add).
    wc_pack = np.zeros((C + 1, WC), np.float32)
    for co in range(C):
        wc_pack[co, co::C] = 1.0
    wc_pack[C, :] = np.tile(b1.reshape(C), W)

    # du_pack: all conv_du weights/biases + conv2 bias in one padded tile.
    du_pack = np.zeros((C + Cr + 3, C), np.float32)
    du_pack[0:C, 0:Cr] = wd1
    du_pack[C:C + Cr, 0:C] = wd2
    du_pack[C + Cr, 0:C] = b2.reshape(C)
    du_pack[C + Cr + 1, 0:Cr] = bd1.reshape(Cr)
    du_pack[C + Cr + 2, 0:C] = bd2.reshape(C)

    return (jnp.asarray(band1, jnp.bfloat16), jnp.asarray(w2pool),
            jnp.asarray(wc_pack), jnp.asarray(du_pack))


def ca_layer_forward(x_nchw, params):
    """CALayer forward. x_nchw: (B, C, H, W) float32 (PyTorch layout)."""
    B, C, H, W = x_nchw.shape
    Cr = params[4].shape[1]
    WC = W * C

    # Boundary layout plumbing: NCHW -> lane-dense (B, H, W*C). The activation
    # is passed exactly once; lane density is best when W*C % 128 == 0.
    xd = jnp.transpose(x_nchw, (0, 2, 3, 1)).reshape(B, H, WC)
    band1, w2pool, wc_pack, du_pack = _prepare_operands(params, H, W)

    out = pl.pallas_call(
        _ca_layer_kernel,
        out_shape=jax.ShapeDtypeStruct((B, H, WC), x_nchw.dtype),
        grid=(B,),
        in_specs=[
            pl.BlockSpec((pl.Squeezed(), H, WC), lambda b: (b, 0, 0)),
            pl.BlockSpec((3, WC, WC), lambda b: (0, 0, 0)),      # conv1 bands (bf16)
            pl.BlockSpec((3, WC, C), lambda b: (0, 0, 0)),       # pooled conv2 (f32)
            pl.BlockSpec((C + 1, WC), lambda b: (0, 0)),         # replication + b1
            pl.BlockSpec((C + Cr + 3, C), lambda b: (0, 0)),     # packed conv_du
        ],
        out_specs=pl.BlockSpec((pl.Squeezed(), H, WC), lambda b: (b, 0, 0)),
        scratch_shapes=[pltpu.VMEM((H + 2, WC), jnp.float32)],
        compiler_params=pltpu.CompilerParams(
            dimension_semantics=("parallel",)),
    )(xd, band1, w2pool, wc_pack, du_pack)

    out = out.reshape(B, H, W, C)
    return jnp.transpose(out, (0, 3, 1, 2))       # back to NCHW


def ca_layer_reference(x_nchw, params):
    """Pure-JAX f32 reference (independent path via lax.conv_general_dilated)."""
    w1, b1, w2, b2, wd1, bd1, wd2, bd2 = params
    x = jnp.transpose(x_nchw, (0, 2, 3, 1))
    dn = ('NHWC', 'HWIO', 'NHWC')
    y = lax.conv_general_dilated(x, w1, (1, 1), 'SAME', dimension_numbers=dn) + b1
    y = jnp.maximum(y, 0.0)
    y = lax.conv_general_dilated(y, w2, (1, 1), 'SAME', dimension_numbers=dn) + b2
    y_avg = jnp.mean(y, axis=(1, 2), keepdims=True)                    # (B,1,1,C)
    h = jnp.maximum(jnp.einsum('bijc,cd->bijd', y_avg, wd1) + bd1, 0.0)
    z = jax.nn.sigmoid(jnp.einsum('bijd,dc->bijc', h, wd2) + bd2)
    out = z * y_avg + x
    return jnp.transpose(out, (0, 3, 1, 2))


def init_params(key, channel, reduction):
    cr = channel // reduction
    ks = jax.random.split(key, 8)
    s = 0.1
    w1 = s * jax.random.normal(ks[0], (3, 3, channel, channel), jnp.float32)
    b1 = s * jax.random.normal(ks[1], (1, channel), jnp.float32)
    w2 = s * jax.random.normal(ks[2], (3, 3, channel, channel), jnp.float32)
    b2 = s * jax.random.normal(ks[3], (1, channel), jnp.float32)
    wd1 = s * jax.random.normal(ks[4], (channel, cr), jnp.float32)
    bd1 = s * jax.random.normal(ks[5], (1, cr), jnp.float32)
    wd2 = s * jax.random.normal(ks[6], (cr, channel), jnp.float32)
    bd2 = s * jax.random.normal(ks[7], (1, channel), jnp.float32)
    return (w1, b1, w2, b2, wd1, bd1, wd2, bd2)


if __name__ == "__main__":
    key = jax.random.PRNGKey(0)
    kx, kp = jax.random.split(key)

    B, C, H, W = 2, 8, 16, 16        # W*C = 128 -> fully lane-dense layout
    reduction = 4                    # hidden channels = C // reduction = 2

    x = jax.random.normal(kx, (B, C, H, W), dtype=jnp.float32)
    params = init_params(kp, C, reduction)

    out = jax.block_until_ready(ca_layer_forward(x, params))
    ref = ca_layer_reference(x, params)

    assert out.shape == (B, C, H, W)
    max_err = float(jnp.max(jnp.abs(out - ref)))
    # conv1 uses bf16 MXU operands with f32 accumulation -> small mixed-
    # precision deviation from the pure-f32 reference is expected.
    if max_err > 2e-2:
        raise AssertionError(f"kernel/reference mismatch, max abs err = {max_err}")

    print("KERNEL_OK")
</pallas_src>

<mosaic_0001>
module attributes {stable_mosaic.version = 11 : i64} {
  func.func @_ca_layer_kernel(%arg0: i32, %arg1: memref<1x16x128xf32, #tpu.memory_space<vmem>>, %arg2: memref<3x128x128xbf16, #tpu.memory_space<vmem>>, %arg3: memref<3x128x8xf32, #tpu.memory_space<vmem>>, %arg4: memref<9x128xf32, #tpu.memory_space<vmem>>, %arg5: memref<13x8xf32, #tpu.memory_space<vmem>>, %arg6: memref<1x16x128xf32, #tpu.memory_space<vmem>>, %arg7: memref<18x128xf32, #tpu.memory_space<vmem>>) attributes {dimension_semantics = [#tpu.dimension_semantics<parallel>], iteration_bounds = array<i64: 2>, scalar_prefetch = 0 : i64, scratch_operands = 1 : i64, tpu.core_type = #tpu.core_type<tc>, window_params = [{transform_indices = @transform_0, window_bounds = array<i64: 1, 16, 128>}, {pipeline_mode = #tpu.pipeline_mode<synchronous>, transform_indices = @transform_1, window_bounds = array<i64: 3, 128, 128>}, {pipeline_mode = #tpu.pipeline_mode<synchronous>, transform_indices = @transform_2, window_bounds = array<i64: 3, 128, 8>}, {pipeline_mode = #tpu.pipeline_mode<synchronous>, transform_indices = @transform_3, window_bounds = array<i64: 9, 128>}, {pipeline_mode = #tpu.pipeline_mode<synchronous>, transform_indices = @transform_4, window_bounds = array<i64: 13, 8>}, {transform_indices = @transform_5, window_bounds = array<i64: 1, 16, 128>}]} {
    %cst = arith.constant 0.000000e+00 : f32
    %0 = vector.broadcast %cst : f32 to vector<1x128xf32>
    %c0 = arith.constant 0 : index
    %c0_0 = arith.constant 0 : index
    %1 = vector.load %arg7[%c0, %c0_0] : memref<18x128xf32, #tpu.memory_space<vmem>>, vector<1x128xf32>
    tpu.vector_store %arg7[%c0, %c0_0], %0 {strides = array<i32>} : memref<18x128xf32, #tpu.memory_space<vmem>>, vector<1x128xf32>,
    %c17 = arith.constant 17 : index
    %c0_1 = arith.constant 0 : index
    %2 = vector.load %arg7[%c17, %c0_1] : memref<18x128xf32, #tpu.memory_space<vmem>>, vector<1x128xf32>
    tpu.vector_store %arg7[%c17, %c0_1], %0 {strides = array<i32>} : memref<18x128xf32, #tpu.memory_space<vmem>>, vector<1x128xf32>,
    %c0_2 = arith.constant 0 : index
    %c0_3 = arith.constant 0 : index
    %c0_4 = arith.constant 0 : index
    %3 = vector.load %arg1[%c0_2, %c0_3, %c0_4] : memref<1x16x128xf32, #tpu.memory_space<vmem>>, vector<1x16x128xf32>
    %4 = vector.shape_cast %3 : vector<1x16x128xf32> to vector<16x128xf32>
    %c1 = arith.constant 1 : index
    %c0_5 = arith.constant 0 : index
    %5 = vector.load %arg7[%c1, %c0_5] : memref<18x128xf32, #tpu.memory_space<vmem>>, vector<16x128xf32>
    tpu.vector_store %arg7[%c1, %c0_5], %4 {strides = array<i32>} : memref<18x128xf32, #tpu.memory_space<vmem>>, vector<16x128xf32>,
    %c8 = arith.constant 8 : index
    %c0_6 = arith.constant 0 : index
    %6 = vector.load %arg4[%c8, %c0_6] : memref<9x128xf32, #tpu.memory_space<vmem>>, vector<1x128xf32>
    %c0_7 = arith.constant 0 : index
    %c0_8 = arith.constant 0 : index
    %7 = vector.load %arg7[%c0_7, %c0_8] : memref<18x128xf32, #tpu.memory_space<vmem>>, vector<16x128xf32>
    %8 = arith.truncf %7 : vector<16x128xf32> to vector<16x128xbf16>
    %c0_9 = arith.constant 0 : index
    %c0_10 = arith.constant 0 : index
    %c0_11 = arith.constant 0 : index
    %9 = vector.load %arg2[%c0_9, %c0_10, %c0_11] : memref<3x128x128xbf16, #tpu.memory_space<vmem>>, vector<1x128x128xbf16>
    %10 = vector.shape_cast %9 : vector<1x128x128xbf16> to vector<128x128xbf16>
    %cst_12 = arith.constant dense<0.000000e+00> : vector<16x128xf32>
    %11 = tpu.matmul %8, %10, %cst_12 {dimension_numbers = #tpu.dot_dimension_numbers<[1], [0], [0], [1], [0, 0, 1, 1], [], []>} : vector<16x128xbf16>, vector<128x128xbf16>, vector<16x128xf32> -> vector<16x128xf32>
    %c1_13 = arith.constant 1 : index
    %c0_14 = arith.constant 0 : index
    %12 = vector.load %arg7[%c1_13, %c0_14] : memref<18x128xf32, #tpu.memory_space<vmem>>, vector<16x128xf32>
    %13 = arith.truncf %12 : vector<16x128xf32> to vector<16x128xbf16>
    %c1_15 = arith.constant 1 : index
    %c0_16 = arith.constant 0 : index
    %c0_17 = arith.constant 0 : index
    %14 = vector.load %arg2[%c1_15, %c0_16, %c0_17] : memref<3x128x128xbf16, #tpu.memory_space<vmem>>, vector<1x128x128xbf16>
    %15 = vector.shape_cast %14 : vector<1x128x128xbf16> to vector<128x128xbf16>
    %cst_18 = arith.constant dense<0.000000e+00> : vector<16x128xf32>
    %16 = tpu.matmul %13, %15, %cst_18 {dimension_numbers = #tpu.dot_dimension_numbers<[1], [0], [0], [1], [0, 0, 1, 1], [], []>} : vector<16x128xbf16>, vector<128x128xbf16>, vector<16x128xf32> -> vector<16x128xf32>
    %17 = arith.addf %11, %16 : vector<16x128xf32>
    %c2 = arith.constant 2 : index
    %c0_19 = arith.constant 0 : index
    %18 = vector.load %arg7[%c2, %c0_19] : memref<18x128xf32, #tpu.memory_space<vmem>>, vector<16x128xf32>
    %19 = arith.truncf %18 : vector<16x128xf32> to vector<16x128xbf16>
    %c2_20 = arith.constant 2 : index
    %c0_21 = arith.constant 0 : index
    %c0_22 = arith.constant 0 : index
    %20 = vector.load %arg2[%c2_20, %c0_21, %c0_22] : memref<3x128x128xbf16, #tpu.memory_space<vmem>>, vector<1x128x128xbf16>
    %21 = vector.shape_cast %20 : vector<1x128x128xbf16> to vector<128x128xbf16>
    %cst_23 = arith.constant dense<0.000000e+00> : vector<16x128xf32>
    %22 = tpu.matmul %19, %21, %cst_23 {dimension_numbers = #tpu.dot_dimension_numbers<[1], [0], [0], [1], [0, 0, 1, 1], [], []>} : vector<16x128xbf16>, vector<128x128xbf16>, vector<16x128xf32> -> vector<16x128xf32>
    %23 = arith.addf %17, %22 : vector<16x128xf32>
    %24 = vector.broadcast %6 : vector<1x128xf32> to vector<16x128xf32>
    %25 = arith.addf %23, %24 : vector<16x128xf32>
    %cst_24 = arith.constant 0.000000e+00 : f32
    %26 = vector.broadcast %cst_24 : f32 to vector<16x128xf32>
    %27 = arith.maximumf %25, %26 : vector<16x128xf32>
    %cst_25 = arith.constant dense<0.000000e+00> : vector<128xf32>
    %28 = vector.multi_reduction <add>, %27, %cst_25 [0] : vector<16x128xf32> to vector<128xf32>
    %29 = vector.shape_cast %28 : vector<128xf32> to vector<1x128xf32>
    %30 = vector.extract_strided_slice %27 {offsets = [15, 0], sizes = [1, 128], strides = [1, 1]} : vector<16x128xf32> to vector<1x128xf32>
    %31 = arith.subf %29, %30 : vector<1x128xf32>
    %32 = vector.extract_strided_slice %27 {offsets = [0, 0], sizes = [1, 128], strides = [1, 1]} : vector<16x128xf32> to vector<1x128xf32>
    %33 = arith.subf %29, %32 : vector<1x128xf32>
    %c10 = arith.constant 10 : index
    %c0_26 = arith.constant 0 : index
    %34 = vector.load %arg5[%c10, %c0_26] : memref<13x8xf32, #tpu.memory_space<vmem>>, vector<1x8xf32>
    %c0_27 = arith.constant 0 : index
    %c0_28 = arith.constant 0 : index
    %c0_29 = arith.constant 0 : index
    %35 = vector.load %arg3[%c0_27, %c0_28, %c0_29] : memref<3x128x8xf32, #tpu.memory_space<vmem>>, vector<1x128x8xf32>
    %36 = vector.shape_cast %35 : vector<1x128x8xf32> to vector<128x8xf32>
    %cst_30 = arith.constant dense<0.000000e+00> : vector<1x8xf32>
    %37 = tpu.matmul %31, %36, %cst_30 {dimension_numbers = #tpu.dot_dimension_numbers<[1], [0], [0], [1], [0, 0, 1, 1], [], []>} : vector<1x128xf32>, vector<128x8xf32>, vector<1x8xf32> -> vector<1x8xf32>
    %c1_31 = arith.constant 1 : index
    %c0_32 = arith.constant 0 : index
    %c0_33 = arith.constant 0 : index
    %38 = vector.load %arg3[%c1_31, %c0_32, %c0_33] : memref<3x128x8xf32, #tpu.memory_space<vmem>>, vector<1x128x8xf32>
    %39 = vector.shape_cast %38 : vector<1x128x8xf32> to vector<128x8xf32>
    %cst_34 = arith.constant dense<0.000000e+00> : vector<1x8xf32>
    %40 = tpu.matmul %29, %39, %cst_34 {dimension_numbers = #tpu.dot_dimension_numbers<[1], [0], [0], [1], [0, 0, 1, 1], [], []>} : vector<1x128xf32>, vector<128x8xf32>, vector<1x8xf32> -> vector<1x8xf32>
    %41 = arith.addf %37, %40 : vector<1x8xf32>
    %c2_35 = arith.constant 2 : index
    %c0_36 = arith.constant 0 : index
    %c0_37 = arith.constant 0 : index
    %42 = vector.load %arg3[%c2_35, %c0_36, %c0_37] : memref<3x128x8xf32, #tpu.memory_space<vmem>>, vector<1x128x8xf32>
    %43 = vector.shape_cast %42 : vector<1x128x8xf32> to vector<128x8xf32>
    %cst_38 = arith.constant dense<0.000000e+00> : vector<1x8xf32>
    %44 = tpu.matmul %33, %43, %cst_38 {dimension_numbers = #tpu.dot_dimension_numbers<[1], [0], [0], [1], [0, 0, 1, 1], [], []>} : vector<1x128xf32>, vector<128x8xf32>, vector<1x8xf32> -> vector<1x8xf32>
    %45 = arith.addf %41, %44 : vector<1x8xf32>
    %46 = arith.addf %45, %34 : vector<1x8xf32>
    %c0_39 = arith.constant 0 : index
    %c0_40 = arith.constant 0 : index
    %47 = vector.load %arg5[%c0_39, %c0_40] : memref<13x8xf32, #tpu.memory_space<vmem>>, vector<8x2xf32>
    %c8_41 = arith.constant 8 : index
    %c0_42 = arith.constant 0 : index
    %48 = vector.load %arg5[%c8_41, %c0_42] : memref<13x8xf32, #tpu.memory_space<vmem>>, vector<2x8xf32>
    %c11 = arith.constant 11 : index
    %c0_43 = arith.constant 0 : index
    %49 = vector.load %arg5[%c11, %c0_43] : memref<13x8xf32, #tpu.memory_space<vmem>>, vector<1x2xf32>
    %c12 = arith.constant 12 : index
    %c0_44 = arith.constant 0 : index
    %50 = vector.load %arg5[%c12, %c0_44] : memref<13x8xf32, #tpu.memory_space<vmem>>, vector<1x8xf32>
    %cst_45 = arith.constant dense<0.000000e+00> : vector<1x2xf32>
    %51 = tpu.matmul %46, %47, %cst_45 {dimension_numbers = #tpu.dot_dimension_numbers<[1], [0], [0], [1], [0, 0, 1, 1], [], []>} : vector<1x8xf32>, vector<8x2xf32>, vector<1x2xf32> -> vector<1x2xf32>
    %52 = arith.addf %51, %49 : vector<1x2xf32>
    %cst_46 = arith.constant 0.000000e+00 : f32
    %53 = vector.broadcast %cst_46 : f32 to vector<1x2xf32>
    %54 = arith.maximumf %52, %53 : vector<1x2xf32>
    %cst_47 = arith.constant dense<0.000000e+00> : vector<1x8xf32>
    %55 = tpu.matmul %54, %48, %cst_47 {dimension_numbers = #tpu.dot_dimension_numbers<[1], [0], [0], [1], [0, 0, 1, 1], [], []>} : vector<1x2xf32>, vector<2x8xf32>, vector<1x8xf32> -> vector<1x8xf32>
    %56 = arith.addf %55, %50 : vector<1x8xf32>
    %57 = arith.negf %56 : vector<1x8xf32>
    %58 = math.exp %57 : vector<1x8xf32>
    %cst_48 = arith.constant 1.000000e+00 : f32
    %59 = vector.broadcast %cst_48 : f32 to vector<1x8xf32>
    %60 = arith.addf %59, %58 : vector<1x8xf32>
    %61 = arith.divf %59, %60 : vector<1x8xf32>
    %c0_49 = arith.constant 0 : index
    %c0_50 = arith.constant 0 : index
    %62 = vector.load %arg4[%c0_49, %c0_50] : memref<9x128xf32, #tpu.memory_space<vmem>>, vector<8x128xf32>
    %63 = arith.mulf %61, %46 : vector<1x8xf32>
    %cst_51 = arith.constant dense<0.000000e+00> : vector<1x128xf32>
    %64 = tpu.matmul %63, %62, %cst_51 {dimension_numbers = #tpu.dot_dimension_numbers<[1], [0], [0], [1], [0, 0, 1, 1], [], []>} : vector<1x8xf32>, vector<8x128xf32>, vector<1x128xf32> -> vector<1x128xf32>
    %c0_52 = arith.constant 0 : index
    %c0_53 = arith.constant 0 : index
    %c0_54 = arith.constant 0 : index
    %65 = vector.load %arg1[%c0_52, %c0_53, %c0_54] : memref<1x16x128xf32, #tpu.memory_space<vmem>>, vector<1x16x128xf32>
    %66 = vector.shape_cast %65 : vector<1x16x128xf32> to vector<16x128xf32>
    %67 = vector.broadcast %64 : vector<1x128xf32> to vector<16x128xf32>
    %68 = arith.addf %66, %67 : vector<16x128xf32>
    %c0_55 = arith.constant 0 : index
    %c0_56 = arith.constant 0 : index
    %c0_57 = arith.constant 0 : index
    %69 = vector.load %arg6[%c0_55, %c0_56, %c0_57] : memref<1x16x128xf32, #tpu.memory_space<vmem>>, vector<1x16x128xf32>
    %70 = vector.shape_cast %69 : vector<1x16x128xf32> to vector<16x128xf32>
    %71 = vector.shape_cast %68 : vector<16x128xf32> to vector<1x16x128xf32>
    tpu.vector_store %arg6[%c0_55, %c0_56, %c0_57], %71 {strides = array<i32>} : memref<1x16x128xf32, #tpu.memory_space<vmem>>, vector<1x16x128xf32>,
    return
  }
  func.func @transform_0(%arg0: i32) -> (i32, i32, i32) {
    %c0_i32 = arith.constant 0 : i32
    %c0_i32_0 = arith.constant 0 : i32
    %c0_i32_1 = arith.constant 0 : i32
    return %arg0, %c0_i32, %c0_i32_0 : i32, i32, i32
  }
  func.func @transform_1(%arg0: i32) -> (i32, i32, i32) {
    %c0_i32 = arith.constant 0 : i32
    %c0_i32_0 = arith.constant 0 : i32
    %c0_i32_1 = arith.constant 0 : i32
    %c0_i32_2 = arith.constant 0 : i32
    return %c0_i32, %c0_i32_0, %c0_i32_1 : i32, i32, i32
  }
  func.func @transform_2(%arg0: i32) -> (i32, i32, i32) {
    %c0_i32 = arith.constant 0 : i32
    %c0_i32_0 = arith.constant 0 : i32
    %c0_i32_1 = arith.constant 0 : i32
    %c0_i32_2 = arith.constant 0 : i32
    return %c0_i32, %c0_i32_0, %c0_i32_1 : i32, i32, i32
  }
  func.func @transform_3(%arg0: i32) -> (i32, i32) {
    %c0_i32 = arith.constant 0 : i32
    %c0_i32_0 = arith.constant 0 : i32
    %c0_i32_1 = arith.constant 0 : i32
    return %c0_i32, %c0_i32_0 : i32, i32
  }
  func.func @transform_4(%arg0: i32) -> (i32, i32) {
    %c0_i32 = arith.constant 0 : i32
    %c0_i32_0 = arith.constant 0 : i32
    %c0_i32_1 = arith.constant 0 : i32
    return %c0_i32, %c0_i32_0 : i32, i32
  }
  func.func @transform_5(%arg0: i32) -> (i32, i32, i32) {
    %c0_i32 = arith.constant 0 : i32
    %c0_i32_0 = arith.constant 0 : i32
    %c0_i32_1 = arith.constant 0 : i32
    return %arg0, %c0_i32, %c0_i32_0 : i32, i32, i32
  }
}

</mosaic_0001>

<bundles_post_ra>
// kernel: tpu_custom_call.1
= control target key start
LH: loop header
LB: loop body
LE: loop exit
PB: predicated region body
PF: predicated region fallthrough
CT: control target
= control target key end

     0   :  { %10 = vsyncpa [#allocation4], 0  ;;  %s2205_s0 = inlined_call_operand.vmem [shape: f32[2,16,128], index: 0, kind: input, shape index: {}]   ;;  %s2206_s1 = inlined_call_operand.vmem [shape: bf16[3,128,128], index: 1, kind: input, shape index: {}]   ;;  %s2207_s2 = inlined_call_operand.vmem [shape: f32[3,128,8], index: 2, kind: input, shape index: {}]   ;;  %s2208_s3 = inlined_call_operand.vmem [shape: f32[9,128], index: 3, kind: input, shape index: {}]   ;;  %s2209_s4 = inlined_call_operand.vmem [shape: f32[13,8], index: 4, kind: input, shape index: {}]   ;;  %s2210_s5 = inlined_call_operand.hbm [shape: f32[2,16,128], index: 5, kind: output, shape index: {}]  }
   0x1   :  { %12 = vsyncpa [#allocation4 + $0x1], 0  ;;  %s1782_s18 = smov 0   ;;  %s1784_s19 = smov 0  }
   0x2   :  { %s1786_s20 = smov 0   ;;  %s1788_s21 = smov 0  }
   0x3 LB: > { %s1803_s22 = sadd.s32 4294967295, %s1744_s21   ;;  %s1166_s23 = sadd.s32 4294967294, %s1744_s21   ;;  %s1744_s21 = sphi %s1788_s21, %s2216_s21   ;;  %s1740_s20 = sphi %s1786_s20, %s2215_s20   ;;  %s1736_s19 = sphi %s1784_s19, %s2214_s19   ;;  %s1732_s18 = sphi %s1782_s18, %s2213_s18  }
   0x4   : > { %s1807_s24 = sadd.s32 1, %s1744_s21   ;;  %s135_s25 = sadd.s32 1, %s1740_s20 }
   0x5   : > { %s132_s26 = ssub.s32 %s1744_s21, %s1807_s24  ;;  %p145_p0 = scmp.ne.s32.totalorder %s1740_s20, %s1736_s19 }
   0x6   : > { %p133_p1 = scmp.eq.s32.totalorder %s132_s26, 0  ;;  %p146_p2 = scmp.eq.s32.totalorder %s1803_s22, 1 }
   0x7   : > { %p151_p3 = scmp.ne.s32.totalorder %s1736_s19, %s1732_s18  ;;  %p152_p4 = scmp.eq.s32.totalorder %s1166_s23, 1 }
   0x8   : > { %s1818_s27 = scalar_select %p133_p1, %s1740_s20, %s135_s25  }
   0x9   : > { %p1820_p5 = por %p146_p2, %p145_p0  ;;  %p1824_p6 = por %p152_p4, %p151_p3 }
   0xa   : > { %p1169_p7 = scmp.ge.s32.totalorder %s1744_s21, 1  ;;  %p190_p8 = scmp.lt.s32.totalorder %s1744_s21, 3 }
   0xc   : > { %p191_p9 = pnand %p1169_p7, %p190_p8 }
   0xd   : > { %v1654_v0 = vld [vmem:[%s2206_s1 + $0x40] sm:$0xff] (!%p191_p9)   ;;  %v1746_v1 = vmov (!%p191_p9), 0.0   ;;  %v1656_v3 = vld [vmem:[%s2206_s1 + $0x48] sm:$0xff] (!%p191_p9)   ;;  %vm1747_vm0 = vmmov (!%p191_p9), 0   ;;  %p218_p10 = scmp.lt.s32.totalorder (!%p191_p9), %s1803_s22, 1  ;;  %v1658_v5 = vld [vmem:[%s2206_s1 + $0x50] sm:$0xff] (!%p191_p9)  }
   0xe   : > { %194 = sbr.rel (%p191_p9) target bundleno = 1249 (0x4e1), region = 40  ;;  %1358 = vmatprep.subr.bf16.mxu0 (!%p191_p9), %v1746_v1  ;;  %224 = vst [vmem:[#allocation2] sm:$0x1] (!%p191_p9), %v1746_v1  ;;  %225 = vst [vmem:[#allocation2 + $0x11] sm:$0x1] (!%p191_p9), %v1746_v1  ;;  %1378 = vmatprep.subr.bf16.mxu1 (!%p191_p9), %v1746_v1  ;;  %v1655_v2 = vld [vmem:[%s2206_s1] sm:$0xff] (!%p191_p9)  }
   0xf   : > { %1359 = vmatpush3.bf16.msra.mxu0 (!%p191_p9), %v1654_v0  ;;  %1374 = vmatprep.mubr.msk.bf16.mxu0 (!%p191_p9), %vm1747_vm0, %v1746_v1  ;;  %v1657_v4 = vld [vmem:[%s2206_s1 + $0x8] sm:$0xff] (!%p191_p9)   ;;  %v1659_v6 = vld [vmem:[%s2206_s1 + $0x10] sm:$0xff] (!%p191_p9)   ;;  %v1660_v7 = vld [vmem:[%s2206_s1 + $0x58] sm:$0xff] (!%p191_p9)   ;;  %v1748_v37 = vmov (!%p191_p9), 0.0|0.0   ;;  %vm846_vm1 = vcmask (!%p191_p9), 64512   ;;  %vm925_vm2 = vcmask (!%p191_p9), 1041408  }
  0x10   : > { %1379 = vmatpush3.bf16.msra.mxu1 (!%p191_p9), %v1655_v2  ;;  %1360 = vmatprep.subr.bf16.mxu0 (!%p191_p9), %v1746_v1  ;;  %v1661_v8 = vld [vmem:[%s2206_s1 + $0x18] sm:$0xff] (!%p191_p9)   ;;  %v1662_v9 = vld [vmem:[%s2206_s1 + $0x60] sm:$0xff] (!%p191_p9)   ;;  %v1664_v13 = vld [vmem:[%s2206_s1 + $0x68] sm:$0xff] (!%p191_p9)   ;;  %vm921_vm3 = vcmask (!%p191_p9), 15360   ;;  %s215_s8 = sand.u32 (!%p191_p9), 1, %s1736_s19   ;;  %s1273_s12 = sshll.u32 (!%p191_p9), %s1803_s22, 8 }
  0x11   : > { %1380 = vmatprep.subr.bf16.mxu1 (!%p191_p9), %v1746_v1  ;;  %1394 = vmatprep.mubr.msk.bf16.mxu1 (!%p191_p9), %vm1747_vm0, %v1746_v1  ;;  %v1663_v10 = vld [vmem:[%s2206_s1 + $0x20] sm:$0xff] (!%p191_p9)   ;;  %v1665_v14 = vld [vmem:[%s2206_s1 + $0x28] sm:$0xff] (!%p191_p9)   ;;  %v1666_v15 = vld [vmem:[%s2206_s1 + $0x70] sm:$0xff] (!%p191_p9)   ;;  %s1749_s17 = smov (!%p191_p9), [#allocation3]  }
  0x12   : > { %v1667_v16 = vld [vmem:[%s2206_s1 + $0x30] sm:$0xff] (!%p191_p9)   ;;  %v1668_v17 = vld [vmem:[%s2206_s1 + $0x78] sm:$0xff] (!%p191_p9)   ;;  %v1670_v23 = vld [vmem:[%s2206_s1 + $0x80] sm:$0xff] (!%p191_p9)   ;;  %s1686_s23 = sshll.u32 (!%p191_p9), %s1749_s17, 4  ;;  %s1687_s23 = int_to_ptr.vmem [resolvable:$false] %s1686_s23 }
  0x13   : > { %1361 = vmatpush3.bf16.msra.mxu0 (!%p191_p9), %v1656_v3  ;;  %v1669_v18 = vld [vmem:[%s2206_s1 + $0x38] sm:$0xff] (!%p191_p9)   ;;  %v1671_v24 = vld [vmem:[%s2206_s1 + $0x88] sm:$0xff] (!%p191_p9)   ;;  %v1672_v25 = vld [vmem:[%s2206_s1 + $0x90] sm:$0xff] (!%p191_p9)   ;;  %s1688_s25 = scalar_lea.vmem (!%p191_p9), %s1687_s23, 512 }
  0x14   : > { %1381 = vmatpush3.bf16.msra.mxu1 (!%p191_p9), %v1657_v4  ;;  %1362 = vmatprep.subr.bf16.mxu0 (!%p191_p9), %v1746_v1  ;;  %v1673_v26 = vld [vmem:[%s2206_s1 + $0x98] sm:$0xff] (!%p191_p9)   ;;  %v1674_v27 = vld [vmem:[%s2206_s1 + $0xa0] sm:$0xff] (!%p191_p9)   ;;  %v1675_v28 = vld [vmem:[%s2206_s1 + $0xa8] sm:$0xff] (!%p191_p9)  }
  0x15   : > { %s219_s15 = scalar_select %p218_p10, %s1803_s22, 1  ;;  %1382 = vmatprep.subr.bf16.mxu1 %v1746_v1  ;;  %v1676_v29 = vld [vmem:[%s2206_s1 + $0xb0] sm:$0xff]   ;;  %v1677_v30 = vld [vmem:[%s2206_s1 + $0xb8] sm:$0xff]   ;;  %v1230_v34 = vld [vmem:[%s2207_s2 + $0x80] sm:$0xff] }
  0x16   : > { %v1231_v35 = vld [vmem:[%s2207_s2 + $0x88] sm:$0xff]  ;;  %v1232_v36 = vld [vmem:[%s2207_s2 + $0x90] sm:$0xff]  ;;  %v1233_v39 = vld [vmem:[%s2207_s2 + $0x98] sm:$0xff]  ;;  %s2164_s22 = scalar_lea.sflag [#allocation4], %s215_s8 }
  0x17   : > { %1363 = vmatpush3.bf16.msra.mxu0 %v1658_v5  ;;  %s1272_s26 = sshll.u32 %s219_s15, 4  ;;  %v1539_v38 = vpack.c.bf16 %v1231_v35, %v1230_v34  ;;  %v577_v40 = vld [vmem:[%s2207_s2] sm:$0xff]  ;;  %v578_v41 = vld [vmem:[%s2207_s2 + $0x8] sm:$0xff]  ;;  %v1542_v43 = vpack.c.bf16 %v1233_v39, %v1232_v36  ;;  %v579_v47 = vld [vmem:[%s2207_s2 + $0x10] sm:$0xff]  ;;  %s2160_s15 = scalar_lea.hbm %s2210_s5, %s1273_s12 }
  0x18   : > { %1383 = vmatpush3.bf16.msra.mxu1 %v1659_v6  ;;  %1364 = vmatprep.subr.bf16.mxu0 %v1746_v1  ;;  %s222_s9 = scalar_lea.vmem %s2205_s0, %s1272_s26  ;;  %v1563_v42 = vpack.c.bf16 %v578_v41, %v577_v40  ;;  %v1234_v44 = vld [vmem:[%s2207_s2 + $0xa0] sm:$0xff]  ;;  %v1235_v45 = vld [vmem:[%s2207_s2 + $0xa8] sm:$0xff]  ;;  %v580_v48 = vld [vmem:[%s2207_s2 + $0x18] sm:$0xff] }
  0x19   : > { %1384 = vmatprep.subr.bf16.mxu1 %v1746_v1  ;;  %v1881_v11 = vld [vmem:[%s222_s9] sm:$0xff]  ;;  %v1883_v12 = vld [vmem:[%s222_s9 + $0x8] sm:$0xff]  ;;  %v1545_v46 = vpack.c.bf16 %v1235_v45, %v1234_v44  ;;  %v1566_v49 = vpack.c.bf16 %v580_v48, %v579_v47  ;;  %v1236_v50 = vld [vmem:[%s2207_s2 + $0xb0] sm:$0xff]  ;;  %s1170_s9 = sshll.u32 %s215_s8, 4 }
  0x1a   : > { %228 = vst [vmem:[#allocation2 + $0x1] sm:$0xff] %v1881_v11  ;;  %229 = vst [vmem:[#allocation2 + $0x9] sm:$0xff] %v1883_v12  ;;  %v252_v21 = vpack.c.bf16 %v1883_v12, %v1881_v11  ;;  %v1237_v51 = vld [vmem:[%s2207_s2 + $0xb8] sm:$0xff]  ;;  %v581_v53 = vld [vmem:[%s2207_s2 + $0x20] sm:$0xff]  ;;  %s217_s10 = scalar_lea.vmem [#allocation3], %s1170_s9 }
  0x1b   : > { %1365 = vmatpush3.bf16.msra.mxu0 %v1660_v7  ;;  %v1548_v52 = vpack.c.bf16 %v1237_v51, %v1236_v50  ;;  %v582_v54 = vld [vmem:[%s2207_s2 + $0x28] sm:$0xff]  ;;  %v1238_v56 = vld [vmem:[%s2207_s2 + $0xc0] sm:$0xff]  ;;  %v583_v59 = vld [vmem:[%s2207_s2 + $0x30] sm:$0xff]  ;;  %s1104_s11 = sshll.u32 %s217_s10, 4  ;;  %s2155_s11 = int_to_ptr.vmem [resolvable:$true] %s1104_s11 }
  0x1c   : > { %1385 = vmatpush3.bf16.msra.mxu1 %v1661_v8  ;;  %1366 = vmatprep.subr.bf16.mxu0 %v1746_v1  ;;  %v1569_v55 = vpack.c.bf16 %v582_v54, %v581_v53  ;;  %v1239_v57 = vld [vmem:[%s2207_s2 + $0xc8] sm:$0xff]  ;;  %v584_v60 = vld [vmem:[%s2207_s2 + $0x38] sm:$0xff]  ;;  %v1240_v62 = vld [vmem:[%s2207_s2 + $0xd0] sm:$0xff]  ;;  %s1682_s16 = scalar_lea.vmem %s2155_s11, 256  ;;  %p1689_p0 = scmp.lt.s32.totalorder %s2155_s11, %s1687_s23 }
  0x1d   : > { %1386 = vmatprep.subr.bf16.mxu1 %v1746_v1  ;;  %v1551_v58 = vpack.c.bf16 %v1239_v57, %v1238_v56  ;;  %v1572_v61 = vpack.c.bf16 %v584_v60, %v583_v59  ;;  %v1241_v63 = vld [vmem:[%s2207_s2 + $0xd8] sm:$0xff]  ;;  %v585_v2 = vld [vmem:[%s2207_s2 + $0x40] sm:$0xff]  ;;  %v586_v3 = vld [vmem:[%s2207_s2 + $0x48] sm:$0xff]  ;;  %p1683_p11 = scmp.ne.s32.totalorder %s2155_s11, %s1682_s16  ;;  %p1690_p1 = scmp.lt.s32.totalorder %s1688_s25, %s1682_s16 }
  0x1e   : > { %v1554_v0 = vpack.c.bf16 %v1241_v63, %v1240_v62  ;;  %v1575_v4 = vpack.c.bf16 %v586_v3, %v585_v2  ;;  %v1242_v5 = vld [vmem:[%s2207_s2 + $0xe0] sm:$0xff]  ;;  %v1243_v6 = vld [vmem:[%s2207_s2 + $0xe8] sm:$0xff]  ;;  %v587_v8 = vld [vmem:[%s2207_s2 + $0x50] sm:$0xff] }
  0x1f   : > { %1367 = vmatpush3.bf16.msra.mxu0 %v1662_v9  ;;  %v1557_v7 = vpack.c.bf16 %v1243_v6, %v1242_v5  ;;  %v588_v9 = vld [vmem:[%s2207_s2 + $0x58] sm:$0xff]  ;;  %v1247_v50 = vld [vmem:[%s2207_s2 + $0x108] sm:$0xff]  ;;  %v1248_v54 = vld [vmem:[%s2207_s2 + $0x110] sm:$0xff]  ;;  %p1684_p12 = pnand %p1683_p11, %p1820_p5  ;;  %p1691_p2 = por %p1690_p1, %p1689_p0 }
  0x20   : > { %1387 = vmatpush3.bf16.msra.mxu1 %v1663_v10  ;;  %1368 = vmatprep.subr.bf16.mxu0 %v1746_v1  ;;  %v1578_v10 = vpack.c.bf16 %v588_v9, %v587_v8  ;;  %v1250_v60 = vld [vmem:[%s2207_s2 + $0x120] sm:$0xff]  ;;  %v1252_v63 = vld [vmem:[%s2207_s2 + $0x130] sm:$0xff] }
  0x21   : > { %1388 = vmatprep.subr.bf16.mxu1 %v1746_v1  ;;  %v231_v19 = vld [vmem:[#allocation2] sm:$0xff]  ;;  %v232_v20 = vld [vmem:[#allocation2 + $0x8] sm:$0xff]  ;;  %v1256_v6 = vld [vmem:[%s2207_s2 + $0x150] sm:$0xff]  ;;  %p1685_p13 = pneg %p1684_p12 }
  0x22   : > { %v233_v22 = vpack.c.bf16 %v232_v20, %v231_v19  ;;  %v448_v31 = vld [vmem:[#allocation2 + $0x2] sm:$0xff]  ;;  %v449_v32 = vld [vmem:[#allocation2 + $0xa] sm:$0xff]  ;;  %v592_v20 = vld [vmem:[%s2207_s2 + $0x78] sm:$0xff] }
  0x23   : > { %1369 = vmatpush3.bf16.msra.mxu0 %v1664_v13  ;;  %v450_v33 = vpack.c.bf16 %v449_v32, %v448_v31  ;;  %v1244_v13 = vld [vmem:[%s2207_s2 + $0xf0] sm:$0xff]  ;;  %v1229_v32 = vld [vmem:[%s2208_s3 + $0x8] ss:$0 sm:$0xff]  ;;  %v1254_v3 = vld [vmem:[%s2207_s2 + $0x140] sm:$0xff]  ;;  %p1692_p3 = pnand %p1691_p2, %p1685_p13 }
  0x24   : > { %1389 = vmatpush3.bf16.msra.mxu1 %v1665_v14  ;;  %1370 = vmatprep.subr.bf16.mxu0 %v1746_v1  ;;  %v1245_v14 = vld [vmem:[%s2207_s2 + $0xf8] sm:$0xff]  ;;  %v591_v19 = vld [vmem:[%s2207_s2 + $0x70] sm:$0xff]  ;;  %v1258_v9 = vld [vmem:[%s2207_s2 + $0x160] sm:$0xff] }
  0x25   : > { %1390 = vmatprep.subr.bf16.mxu1 %v1746_v1 }
  0x27   : > { %1371 = vmatpush3.bf16.msra.mxu0 %v1666_v15  ;;  %v1560_v15 = vpack.c.bf16 %v1245_v14, %v1244_v13  ;;  %v1260_v14 = vld [vmem:[%s2207_s2 + $0x170] sm:$0xff] }
  0x28   : > { %1391 = vmatpush3.bf16.msra.mxu1 %v1667_v16  ;;  %1372 = vmatprep.subr.bf16.mxu0 %v1746_v1  ;;  %v589_v16 = vld [vmem:[%s2207_s2 + $0x60] sm:$0xff] }
  0x29   : > { %1392 = vmatprep.subr.bf16.mxu1 %v1746_v1 }
  0x2b   : > { %1373 = vmatpush3.bf16.msra.mxu0 %v1668_v17  ;;  %v590_v17 = vld [vmem:[%s2207_s2 + $0x68] sm:$0xff] }
  0x2c   : > { %1393 = vmatpush3.bf16.msra.mxu1 %v1669_v18  ;;  %1398 = vmatprep.subr.bf16.mxu0 %v1746_v1  ;;  %v1581_v18 = vpack.c.bf16 %v590_v17, %v589_v16  ;;  %v842_v17 = vld [vmem:[%s2209_s4] sm:$0xff] }
  0x2d   : > { %1538 = vmatprep.subr.bf16.mxu1 %v1748_v37 }
  0x2e   : > { %1375 = vmatmul.mubr.bf16.vlgmr.msra.gmra.mrb[0].mxu0 %v252_v21  ;;  %v1584_v21 = vpack.c.bf16 %v592_v20, %v591_v19 }
  0x2f   : > { %1395 = vmatmul.mubr.bf16.vlgmr.msra.gmra.mrb[0].mxu1 %v233_v22  ;;  %1399 = vmatpush3.bf16.msra.mxu0 %v1670_v23 }
  0x30   : > { %1400 = vmatprep.subr.bf16.mxu0 %v1746_v1  ;;  %1414 = vmatprep.mubr.msk.bf16.mxu0 %vm1747_vm0, %v1746_v1 }
  0x31   : > { %1450 = vmatprep.mubr.msk.f32.mxu1 %vm1747_vm0, %v1746_v1  ;;  %1540 = vmatpush3.bf16.msra.mxu1 %v1539_v38 }
  0x32   : > { %1541 = vmatprep.subr.bf16.mxu1 %v1748_v37 }
  0x33   : > { %1401 = vmatpush3.bf16.msra.mxu0 %v1671_v24 }
  0x34   : > { %1402 = vmatprep.subr.bf16.mxu0 %v1746_v1 }
  0x35   : > { %1543 = vmatpush3.bf16.msra.mxu1 %v1542_v43 }
  0x36   : > { %1544 = vmatprep.subr.bf16.mxu1 %v1748_v37 }
  0x37   : > { %1403 = vmatpush3.bf16.msra.mxu0 %v1672_v25 }
  0x38   : > { %1404 = vmatprep.subr.bf16.mxu0 %v1746_v1 }
  0x39   : > { %1546 = vmatpush3.bf16.msra.mxu1 %v1545_v46 }
  0x3a   : > { %1547 = vmatprep.subr.bf16.mxu1 %v1748_v37 }
  0x3b   : > { %1405 = vmatpush3.bf16.msra.mxu0 %v1673_v26 }
  0x3c   : > { %1406 = vmatprep.subr.bf16.mxu0 %v1746_v1 }
  0x3d   : > { %1549 = vmatpush3.bf16.msra.mxu1 %v1548_v52 }
  0x3e   : > { %1550 = vmatprep.subr.bf16.mxu1 %v1748_v37 }
  0x3f   : > { %1407 = vmatpush3.bf16.msra.mxu0 %v1674_v27 }
  0x40   : > { %1408 = vmatprep.subr.bf16.mxu0 %v1746_v1 }
  0x41   : > { %1552 = vmatpush3.bf16.msra.mxu1 %v1551_v58 }
  0x42   : > { %1553 = vmatprep.subr.bf16.mxu1 %v1748_v37 }
  0x43   : > { %1409 = vmatpush3.bf16.msra.mxu0 %v1675_v28 }
  0x44   : > { %1410 = vmatprep.subr.bf16.mxu0 %v1746_v1 }
  0x45   : > { %1555 = vmatpush3.bf16.msra.mxu1 %v1554_v0  ;;  %v1253_v0 = vld [vmem:[%s2207_s2 + $0x138] sm:$0xff] }
  0x46   : > { %1556 = vmatprep.subr.bf16.mxu1 %v1748_v37  ;;  %v1596_v2 = vpack.c.bf16 %v1253_v0, %v1252_v63 }
  0x47   : > { %1411 = vmatpush3.bf16.msra.mxu0 %v1676_v29 }
  0x48   : > { %1412 = vmatprep.subr.bf16.mxu0 %v1746_v1 }
  0x49   : > { %1558 = vmatpush3.bf16.msra.mxu1 %v1557_v7  ;;  %v1257_v7 = vld [vmem:[%s2207_s2 + $0x158] sm:$0xff] }
  0x4a   : > { %1559 = vmatprep.subr.bf16.mxu1 %v1748_v37  ;;  %v1602_v8 = vpack.c.bf16 %v1257_v7, %v1256_v6 }
  0x4b   : > { %1413 = vmatpush3.bf16.msra.mxu0 %v1677_v30 }
  0x4c   : > { %1562 = vmatprep.subr.bf16.mxu0 %v1748_v37 }
  0x4d   : > { %1561 = vmatpush3.bf16.msra.mxu1 %v1560_v15  ;;  %v1261_v15 = vld [vmem:[%s2207_s2 + $0x178] sm:$0xff] }
  0x4e   : > { %1415 = vmatmul.mubr.bf16.vlgmr.msra.gmra.mrb[4].mxu0 %v450_v33  ;;  %1586 = vmatprep.subr.bf16.mxu1 %v1748_v37  ;;  %v1608_v16 = vpack.c.bf16 %v1261_v15, %v1260_v14 }
  0x4f   : > { %1485 = vmatprep.mubr.msk.f32.mxu0 %vm1747_vm0, %v1746_v1  ;;  %1564 = vmatpush3.bf16.msra.mxu0 %v1563_v42 }
  0x50   : > { %1565 = vmatprep.subr.bf16.mxu0 %v1748_v37 }
  0x53   : > { %1567 = vmatpush3.bf16.msra.mxu0 %v1566_v49  ;;  %v1246_v49 = vld [vmem:[%s2207_s2 + $0x100] sm:$0xff] }
  0x54   : > { %1568 = vmatprep.subr.bf16.mxu0 %v1748_v37  ;;  %v1587_v52 = vpack.c.bf16 %v1247_v50, %v1246_v49 }
  0x57   : > { %1570 = vmatpush3.bf16.msra.mxu0 %v1569_v55  ;;  %v1249_v55 = vld [vmem:[%s2207_s2 + $0x118] sm:$0xff] }
  0x58   : > { %1571 = vmatprep.subr.bf16.mxu0 %v1748_v37  ;;  %v1590_v58 = vpack.c.bf16 %v1249_v55, %v1248_v54 }
  0x5b   : > { %1573 = vmatpush3.bf16.msra.mxu0 %v1572_v61  ;;  %v1251_v61 = vld [vmem:[%s2207_s2 + $0x128] sm:$0xff] }
  0x5c   : > { %1574 = vmatprep.subr.bf16.mxu0 %v1748_v37  ;;  %v1593_v62 = vpack.c.bf16 %v1251_v61, %v1250_v60 }
  0x5f   : > { %1576 = vmatpush3.bf16.msra.mxu0 %v1575_v4  ;;  %v1255_v4 = vld [vmem:[%s2207_s2 + $0x148] sm:$0xff] }
  0x60   : > { %1577 = vmatprep.subr.bf16.mxu0 %v1748_v37  ;;  %v1599_v5 = vpack.c.bf16 %v1255_v4, %v1254_v3 }
  0x63   : > { %1579 = vmatpush3.bf16.msra.mxu0 %v1578_v10  ;;  %v1259_v10 = vld [vmem:[%s2207_s2 + $0x168] sm:$0xff] }
  0x64   : > { %1580 = vmatprep.subr.bf16.mxu0 %v1748_v37  ;;  %v1605_v13 = vpack.c.bf16 %v1259_v10, %v1258_v9 }
  0x67   : > { %1582 = vmatpush3.bf16.msra.mxu0 %v1581_v18 }
  0x68   : > { %1583 = vmatprep.subr.bf16.mxu0 %v1748_v37 }
  0x6b   : > { %1585 = vmatpush3.bf16.msra.mxu0 %v1584_v21 }
  0x6c   : > { %1523 = vmatprep.subr.mxu0 %v1746_v1 }
 0x101   : > { %v352_v22 = vpop.f32.mrb[0].mxu0 }
 0x102   : > { %v441_v23 = vpop.f32.mrb[0].mxu1  ;;  %v1376_v24 = vpop.f32.mrb[1].mxu0 }
 0x103   : > { %v442_v25 = vadd.f32 %v441_v23, %v352_v22  ;;  %v1396_v26 = vpop.f32.mrb[1].mxu1  ;;  %v355_v27 = vpop.f32.mrb[2].mxu0 }
 0x104   : > { %v444_v28 = vpop.f32.mrb[2].mxu1  ;;  %v1377_v29 = vpop.f32.mrb[3].mxu0 }
 0x105   : > { %v445_v30 = vadd.f32 %v444_v28, %v355_v27  ;;  %v1397_v31 = vpop.f32.mrb[3].mxu1  ;;  %v843_v27 = vld [vmem:[%s2209_s4 + $0x8] sm:$0x3]  ;;  %v844_v28 = vld [vmem:[%s2209_s4 + $0xb] sm:$0x1] }
 0x121   : > { %v550_v33 = vpop.f32.mrb[4].mxu0 }
 0x122   : > { %v557_v34 = vadd.f32 %v550_v33, %v442_v25  ;;  %v1416_v35 = vpop.f32.mrb[5].mxu0  ;;  %v845_v33 = vld [vmem:[%s2209_s4 + $0xc] sm:$0x1] }
 0x123   : > { %v553_v36 = vpop.f32.mrb[6].mxu0 }
 0x124   : > { %v563_v38 = vadd.f32 %v1229_v32, %v557_v34  ;;  %v558_v39 = vadd.f32 %v553_v36, %v445_v30  ;;  %v1417_v40 = vpop.f32.mrb[7].mxu0 }
 0x126   : > { %v564_v41 = vadd.f32 %v1229_v32, %v558_v39  ;;  %v565_v42 = vmax.f32 %v563_v38, 0.0 }
 0x128   : > { %v566_v43 = vmax.f32 %v564_v41, 0.0 }
 0x12a   : > { %v567_v44 = vadd.f32 %v566_v43, %v565_v42 }
 0x12c   : > { %v568_v45 = vrot.slane %v567_v44, 4 }
 0x12e   : > { %v569_v46 = vadd.f32 %v568_v45, %v567_v44 }
 0x130   : > { %v570_v47 = vrot.slane %v569_v46, 2 }
 0x132   : > { %v571_v48 = vadd.f32 %v570_v47, %v569_v46 }
 0x134   : > { %v572_v51 = vrot.slane %v571_v48, 1 }
 0x136   : > { %v573_v53 = vadd.f32 %v572_v51, %v571_v48 }
 0x138   : > { %v574_v56 = vsub.f32 %v573_v53, %v566_v43  ;;  %1451 = vmatmul.mubr.f32.vlgmr.msra.gmra.mrb[4].mxu1 %v573_v53  ;;  %v575_v57 = vsub.f32 %v573_v53, %v565_v42  ;;  %v1082_v43 = vlaneseq }
 0x139   : > { %1588 = vmatpush3.bf16.msra.mxu1 %v1587_v52  ;;  %1520 = vmatprep.mubr.msk.f32.mxu1 %vm1747_vm0, %v1746_v1 }
 0x13a   : > { %v681_v59 = vrot.slane %v574_v56, 7  ;;  %1589 = vmatprep.subr.bf16.mxu1 %v1748_v37  ;;  %v1083_v44 = vshrl.u32 %v1082_v43, 7 }
 0x13c   : > { %1486 = vmatmul.mubr.f32.vlgmr.msra.gmra.mrb[8].mxu0 %v681_v59  ;;  %v1084_v45 = vsub.s32 0, %v1083_v44 }
 0x13d   : > { %1591 = vmatpush3.bf16.msra.mxu1 %v1590_v58  ;;  %1525 = vmatprep.mubr.msk.f32.mxu0 %vm1747_vm0, %v1746_v1 }
 0x13e   : > { %1592 = vmatprep.subr.bf16.mxu1 %v1748_v37  ;;  %1524 = vmatpush3.msra.mxu0 %v842_v17 }
 0x13f   : > { %1533 = vmatprep.subr.mxu0 %v1746_v1 }
 0x141   : > { %1594 = vmatpush3.bf16.msra.mxu1 %v1593_v62 }
 0x142   : > { %1595 = vmatprep.subr.bf16.mxu1 %v1748_v37 }
 0x145   : > { %1597 = vmatpush3.bf16.msra.mxu1 %v1596_v2 }
 0x146   : > { %1598 = vmatprep.subr.bf16.mxu1 %v1748_v37 }
 0x149   : > { %1600 = vmatpush3.bf16.msra.mxu1 %v1599_v5 }
 0x14a   : > { %1601 = vmatprep.subr.bf16.mxu1 %v1748_v37 }
 0x14d   : > { %1603 = vmatpush3.bf16.msra.mxu1 %v1602_v8 }
 0x14e   : > { %1604 = vmatprep.subr.bf16.mxu1 %v1748_v37 }
 0x151   : > { %1606 = vmatpush3.bf16.msra.mxu1 %v1605_v13 }
 0x152   : > { %1607 = vmatprep.subr.bf16.mxu1 %v1748_v37  ;;  %v576_v37 = vld [vmem:[%s2209_s4 + $0xa] sm:$0x1] }
 0x155   : > { %1609 = vmatpush3.bf16.msra.mxu1 %v1608_v16 }
 0x156   : > { %1528 = vmatprep.subr.mxu1 %v1746_v1 }
 0x158   : > { %1521 = vmatmul.mubr.f32.vlgmr.msra.gmra.mrb[6].mxu1 %v575_v57 }
 0x159   : > { %1530 = vmatprep.mubr.msk.f32.mxu1 %vm1747_vm0, %v1746_v1  ;;  %1529 = vmatpush3.msk.msra.mxu1 %vm925_vm2, %v843_v27 }
 0x20b   : > { %v676_v18 = vpop.f32.mrb[4].mxu1 }
 0x20c   : > { %v1452_v19 = vpop.f32.mrb[5].mxu1 }
 0x20f   : > { %v749_v20 = vpop.f32.mrb[8].mxu0 }
 0x210   : > { %v750_v21 = vadd.f32 %v749_v20, %v676_v18  ;;  %v1487_v22 = vpop.f32.mrb[9].mxu0 }
 0x22b   : > { %v836_v23 = vpop.f32.mrb[6].mxu1 }
 0x22c   : > { %v840_v24 = vadd.f32 %v836_v23, %v750_v21  ;;  %v1522_v25 = vpop.f32.mrb[7].mxu1 }
 0x22e   : > { %v841_v26 = vadd.f32 %v840_v24, %v576_v37 }
 0x230   : > { %1526 = vmatmul.mubr.msk.f32.vlgmr.msra.gmra.mrb[10].mxu0 %vm846_vm1, %v841_v26 }
 0x231   : > { %1535 = vmatprep.mubr.msk.f32.mxu0 %vm1747_vm0, %v1746_v1  ;;  %v1005_v1 = vld [vmem:[%s2208_s3] sm:$0xff] }
 0x232   : > { %1534 = vmatpush3.msra.mxu0 %v1005_v1 }
 0x303   : > { %v916_v29 = vpop.f32.mrb[10].mxu0 }
 0x304   : > { %v917_v30 = vadd.f32 %v916_v29, %v844_v28  ;;  %v1527_v31 = vpop.f32.mrb[11].mxu0 }
 0x306   : > { %v920_v32 = vmax.f32 %v917_v30, 0.0 }
 0x308   : > { %1531 = vmatmul.mubr.msk.f32.vlgmr.msra.gmra.mrb[8].mxu1 %vm921_vm3, %v920_v32 }
 0x3db   : > { %v995_v34 = vpop.f32.mrb[8].mxu1 }
 0x3dc   : > { %v996_v35 = vadd.f32 %v995_v34, %v845_v33  ;;  %v1532_v36 = vpop.f32.mrb[9].mxu1 }
 0x3de   : > { %v1265_v38 = vmul.f32 -1.442695, %v996_v35 }
 0x3e0   : > { %1678 = vpow2.f32 %v1265_v38 }
 0x3ea   : > { %v1679_v39 = vpop.eup %1678 }
 0x3eb   : > { %v1002_v40 = vadd.f32 1.0, %v1679_v39 }
 0x3ed   : > { %1680 = vrcp.f32 %v1002_v40 }
 0x3f7   : > { %v1681_v41 = vpop.eup %1680 }
 0x3f8   : > { %v1006_v42 = vmul.f32 %v1681_v41, %v841_v26 }
 0x3fa   : > { %1536 = vmatmul.mubr.msk.f32.vlgmr.msra.gmra.mrb[12].mxu0 %vm846_vm1, %v1006_v42 }
 0x4cd   : > { %v1076_v46 = vpop.f32.mrb[12].mxu0 }
 0x4ce   : > { %v1085_v47 = vrot.slane %v1076_v46, %v1084_v45  ;;  %v1537_v48 = vpop.f32.mrb[13].mxu0 }
 0x4d0   : > { %v1086_v49 = vadd.f32 %v1085_v47, %v1881_v11  ;;  %v1087_v50 = vadd.f32 %v1085_v47, %v1883_v12 }
 0x4d2   : > { %1088 = vst [vmem:[%s217_s10] sm:$0xff] %v1086_v49  ;;  %1089 = vst [vmem:[%s217_s10 + $0x8] sm:$0xff] %v1087_v50 }
 0x4d3   : > { %1695 = shalt.err (!%p1692_p3)
}
 0x4d4   : > { %s1696_s26 = scalar_lea.hbm %s2160_s15, 256  ;;  %s1700_s7 = scalar_lea.hbm %s2210_s5, 512 }
 0x4d5   : > { %p1697_p4 = scmp.ne.s32.totalorder %s2160_s15, %s1696_s26  ;;  %p1701_p9 = scmp.lt.u32.totalorder %s2160_s15, %s2210_s5 }
 0x4d6   : > { %p1702_p10 = scmp.lt.u32.totalorder %s1700_s7, %s1696_s26  ;;  %p1704_p12 = scmp.lt.u32.totalorder %s1696_s26, %s2160_s15 }
 0x4d7   : > { %p1698_p7 = pnand %p1697_p4, %p1820_p5 }
 0x4d8   : > { %p1703_p11 = por %p1702_p10, %p1701_p9 }
 0x4d9   : > { %p1699_p8 = pneg %p1698_p7 }
 0x4da   : > { %p1705_p13 = por %p1704_p12, %p1703_p11 }
 0x4dc   : > { %p1706_p0 = pnand %p1705_p13, %p1699_p8 }
 0x4de   : > { %1709 = shalt.err (!%p1706_p0)
}
 0x4df   : > { %s1750_s10 = smov 128   ;;  %s1751_s12 = smov 8  }
 0x4e0   : > { %1610 = dma.vmem_to_hbm [thread:$0]  (%p1820_p5), %s2155_s11, 256, %s2160_s15, %s2164_s22, %s1750_s10, %s1750_s10, %s1751_s12  }
 0x4e1 PF: > { %p1616_p1 = scmp.ge.s32.totalorder %s1744_s21, 2  ;;  %s1119_s13 = sand.u32 1, %s1732_s18  }
 0x4e2   : > { %s1120_s14 = scalar_lea.sflag [#allocation4], %s1119_s13 }
 0x4e3   : > { %p1613_p2 = pnand %p1616_p1, %p1824_p6 }
 0x4e5   : > { %1727 = dma.done.wait (!%p1613_p2), %s1120_s14, 256  }
 0x4e6   : > { %1729 = vsyncadd (!%p1613_p2), %s1120_s14, 4294967040  ;;  %p15_p3 = scmp.ge.s32.totalorder %s1807_s24, 4   ;;  %s2213_s18 = smov %s1736_s19 }
 0x4e7   : > { %s2214_s19 = smov %s1740_s20  ;;  %s2215_s20 = smov %s1818_s27 }
 0x4e8   : > { %s2216_s21 = smov %s1807_s24  ;;  %17 = sbr.rel (!%p15_p3) target bundleno = 3 (0x3), region = 79 }
 0x4ef   :  { %1125 = vsyncpa [#allocation4], 1 }
 0x4f0   :  { %1127 = vsyncpa [#allocation4 + $0x1], 1 }

</bundles_post_ra>
